<compile_context>
chip_gen: v7x
topology: tpu7x:2x2x1
jax: 0.10.0
libtpu: 0.0.40
codegen_flags: <defaults>
</compile_context>

<pallas_src>
import math

import jax
import jax.numpy as jnp
from jax.experimental import pallas as pl
from jax.experimental.pallas import tpu as pltpu


_LOG_SQRT_2PI = 0.5 * math.log(2.0 * math.pi)


def _act_kernel(x_ref, w_ref, b_ref, std_ref, c_ref, noise_ref, act_ref, logp_ref):
    # Hot path: one MXU matmul + cheap VPU elementwise + tiny lane reduction.
    x = x_ref[...]                                                    # (TB, D)
    noise = noise_ref[...]                                            # (TB, A)

    mean = jnp.dot(x, w_ref[...],
                   preferred_element_type=jnp.float32) + b_ref[...]   # (TB, A)

    # sample(): reparameterized with externally supplied standard-normal noise.
    actions = mean + std_ref[...] * noise                             # (TB, A)

    # Normal.log_prob(actions).sum(-1, keepdim=True):
    # z = (actions - mean)/std == noise exactly, so
    #   logp = -0.5*sum(noise^2) - [sum(logstd) + A*0.5*log(2*pi)]  (C from SMEM)
    logp = -0.5 * jnp.sum(noise * noise, axis=-1, keepdims=True) - c_ref[0]

    act_ref[...] = actions.astype(act_ref.dtype)
    logp_ref[...] = logp.astype(logp_ref.dtype)


def _choose_batch_tile(B, D, A, max_block_rows):
    """Batch tile: as big as possible (amortize per-step overhead, approach the
    HBM roofline) while (a) fitting a conservative double-buffered VMEM budget,
    (b) being a multiple of 8 (sublane rule), and (c) leaving >= 2 grid steps
    whenever B > 8 so both v7x TensorCores get work."""
    per_row_bytes = 4 * (D + A + A + 1)              # x + noise + actions + logp, f32
    vmem_budget = 8 * 1024 * 1024                    # << default scoped VMEM on v5e/v6e/v7x
    tb_vmem = max(8, vmem_budget // (2 * per_row_bytes))
    tb_half = ((-(-B // 2)) + 7) // 8 * 8            # ceil(B/2) rounded up to multiple of 8
    tb = min(max_block_rows, tb_vmem, tb_half)
    return max(8, (tb // 8) * 8)


def continuous_act_layer(x, w_t, b, logstd, noise, *, max_block_rows=16384):
    """Forward pass of ContinuousACTLayer (available_actions=None, sampling mode).

    Args:
      x:      (B, inputs_dim) float32
      w_t:    (inputs_dim, action_dim) float32   -- fc_mean weight, pre-transposed
      b:      (1, action_dim) float32            -- fc_mean bias
      logstd: (1, action_dim) float32            -- AddBias parameter (std = exp(logstd))
      noise:  (B, action_dim) float32            -- standard normal draws
      max_block_rows: cap on the batch tile (multiple of 8).

    Returns:
      (actions (B, action_dim), action_log_probs (B, 1), available_actions=None)
    """
    B, D = x.shape
    A = w_t.shape[1]

    x = x.astype(jnp.float32)
    noise = noise.astype(jnp.float32)
    w_t = w_t.astype(jnp.float32)
    b = b.astype(jnp.float32).reshape(1, A)
    logstd = logstd.astype(jnp.float32).reshape(1, A)

    # --- Param-only math hoisted out of the kernel (depends only on logstd) ---
    std = jnp.exp(logstd)                                                     # (1, A)
    c = (jnp.sum(logstd) + A * _LOG_SQRT_2PI).reshape(1).astype(jnp.float32)  # (1,) scalar in SMEM

    # --- Batch tiling: large, VMEM-safe, >=2 steps for v7x 2-TC sharding -----
    tb = _choose_batch_tile(B, D, A, max_block_rows)
    grid = pl.cdiv(B, tb)   # partial last block handled by Pallas: no pad, no slice

    fixed = lambda i: (0, 0)      # resident parameter blocks
    tiled = lambda i: (i, 0)      # batch-tiled blocks

    actions, log_probs = pl.pallas_call(
        _act_kernel,
        out_shape=(
            jax.ShapeDtypeStruct((B, A), jnp.float32),
            jax.ShapeDtypeStruct((B, 1), jnp.float32),
        ),
        grid=(grid,),
        in_specs=[
            pl.BlockSpec((tb, D), tiled),                        # x
            pl.BlockSpec((D, A), fixed),                         # w_t (resident)
            pl.BlockSpec((1, A), fixed),                         # bias (resident)
            pl.BlockSpec((1, A), fixed),                         # std = exp(logstd) (resident)
            pl.BlockSpec(memory_space=pltpu.MemorySpace.SMEM),   # scalar constant C
            pl.BlockSpec((tb, A), tiled),                        # noise
        ],
        out_specs=(
            pl.BlockSpec((tb, A), tiled),                        # actions
            pl.BlockSpec((tb, 1), tiled),                        # log_probs
        ),
        compiler_params=pltpu.CompilerParams(
            # Parallel batch axis: lets the compiler shard the grid across
            # v7x's two TensorCores; harmless on single-TC v5e/v6e.
            dimension_semantics=("parallel",),
            # No vmem_limit override: tile footprint is a few MiB, well under
            # every chip's default scoped-VMEM budget.
        ),
    )(x, w_t, b, std, c, noise)

    return actions, log_probs, None


def _reference(x, w_t, b, logstd, noise):
    mean = x @ w_t + b
    std = jnp.exp(logstd)
    actions = mean + std * noise
    z = (actions - mean) / std
    logp = (-0.5 * z * z - logstd - _LOG_SQRT_2PI).sum(-1, keepdims=True)
    return actions, logp


if __name__ == "__main__":
    inputs_dim = 32
    action_dim = 4

    key = jax.random.PRNGKey(0)
    k_x, k_w, k_ls, k_n, k_x2, k_n2 = jax.random.split(key, 6)

    # Deterministic synthetic parameters (fc_mean weight/bias, logstd "AddBias")
    w_t = 0.01 * jax.random.normal(k_w, (inputs_dim, action_dim), dtype=jnp.float32)
    b = jnp.zeros((1, action_dim), dtype=jnp.float32)
    logstd = 0.1 * jax.random.normal(k_ls, (1, action_dim), dtype=jnp.float32)

    # Test 1: batch that is a multiple of 8 (single grid step).
    B = 8
    x = jax.random.normal(k_x, (B, inputs_dim), dtype=jnp.float32)
    noise = jax.random.normal(k_n, (B, action_dim), dtype=jnp.float32)

    actions, log_probs, avail = continuous_act_layer(x, w_t, b, logstd, noise)
    jax.block_until_ready((actions, log_probs))

    ref_actions, ref_logp = _reference(x, w_t, b, logstd, noise)
    assert actions.shape == (B, action_dim)
    assert log_probs.shape == (B, 1)
    assert avail is None
    assert jnp.allclose(actions, ref_actions, atol=1e-5)
    assert jnp.allclose(log_probs, ref_logp, atol=1e-5)

    # Test 2: ragged batch (exercises >=2 grid steps + partial last block, no pad).
    B2 = 20
    x2 = jax.random.normal(k_x2, (B2, inputs_dim), dtype=jnp.float32)
    noise2 = jax.random.normal(k_n2, (B2, action_dim), dtype=jnp.float32)

    actions2, log_probs2, _ = continuous_act_layer(x2, w_t, b, logstd, noise2)
    jax.block_until_ready((actions2, log_probs2))

    ref_actions2, ref_logp2 = _reference(x2, w_t, b, logstd, noise2)
    assert actions2.shape == (B2, action_dim)
    assert log_probs2.shape == (B2, 1)
    assert jnp.allclose(actions2, ref_actions2, atol=1e-5)
    assert jnp.allclose(log_probs2, ref_logp2, atol=1e-5)

    print("KERNEL_OK")
</pallas_src>

<mosaic_0001>
module attributes {stable_mosaic.version = 11 : i64} {
  func.func @_act_kernel(%arg0: i32, %arg1: memref<8x32xf32, #tpu.memory_space<vmem>>, %arg2: memref<32x4xf32, #tpu.memory_space<vmem>>, %arg3: memref<1x4xf32, #tpu.memory_space<vmem>>, %arg4: memref<1x4xf32, #tpu.memory_space<vmem>>, %arg5: memref<1xf32, #tpu.memory_space<smem>>, %arg6: memref<8x4xf32, #tpu.memory_space<vmem>>, %arg7: memref<8x4xf32, #tpu.memory_space<vmem>>, %arg8: memref<8x1xf32, #tpu.memory_space<vmem>>) attributes {dimension_semantics = [#tpu.dimension_semantics<parallel>], iteration_bounds = array<i64: 1>, scalar_prefetch = 0 : i64, scratch_operands = 0 : i64, tpu.core_type = #tpu.core_type<tc>, window_params = [{transform_indices = @transform_0, window_bounds = array<i64: 8, 32>}, {pipeline_mode = #tpu.pipeline_mode<synchronous>, transform_indices = @transform_1, window_bounds = array<i64: 32, 4>}, {pipeline_mode = #tpu.pipeline_mode<synchronous>, transform_indices = @transform_2, window_bounds = array<i64: 1, 4>}, {pipeline_mode = #tpu.pipeline_mode<synchronous>, transform_indices = @transform_3, window_bounds = array<i64: 1, 4>}, {transform_indices = @transform_4, window_bounds = array<i64: 1>}, {transform_indices = @transform_5, window_bounds = array<i64: 8, 4>}, {transform_indices = @transform_6, window_bounds = array<i64: 8, 4>}, {transform_indices = @transform_7, window_bounds = array<i64: 8, 1>}]} {
    %c0 = arith.constant 0 : index
    %c0_0 = arith.constant 0 : index
    %0 = vector.load %arg1[%c0, %c0_0] : memref<8x32xf32, #tpu.memory_space<vmem>>, vector<8x32xf32>
    %c0_1 = arith.constant 0 : index
    %c0_2 = arith.constant 0 : index
    %1 = vector.load %arg6[%c0_1, %c0_2] : memref<8x4xf32, #tpu.memory_space<vmem>>, vector<8x4xf32>
    %c0_3 = arith.constant 0 : index
    %c0_4 = arith.constant 0 : index
    %2 = vector.load %arg2[%c0_3, %c0_4] : memref<32x4xf32, #tpu.memory_space<vmem>>, vector<32x4xf32>
    %cst = arith.constant dense<0.000000e+00> : vector<8x4xf32>
    %3 = tpu.matmul %0, %2, %cst {dimension_numbers = #tpu.dot_dimension_numbers<[1], [0], [0], [1], [0, 0, 1, 1], [], []>} : vector<8x32xf32>, vector<32x4xf32>, vector<8x4xf32> -> vector<8x4xf32>
    %c0_5 = arith.constant 0 : index
    %c0_6 = arith.constant 0 : index
    %4 = vector.load %arg3[%c0_5, %c0_6] : memref<1x4xf32, #tpu.memory_space<vmem>>, vector<1x4xf32>
    %5 = vector.broadcast %4 : vector<1x4xf32> to vector<8x4xf32>
    %6 = arith.addf %3, %5 : vector<8x4xf32>
    %c0_7 = arith.constant 0 : index
    %c0_8 = arith.constant 0 : index
    %7 = vector.load %arg4[%c0_7, %c0_8] : memref<1x4xf32, #tpu.memory_space<vmem>>, vector<1x4xf32>
    %8 = vector.broadcast %7 : vector<1x4xf32> to vector<8x4xf32>
    %9 = arith.mulf %8, %1 : vector<8x4xf32>
    %10 = arith.addf %6, %9 : vector<8x4xf32>
    %11 = arith.mulf %1, %1 : vector<8x4xf32>
    %cst_9 = arith.constant dense<0.000000e+00> : vector<8xf32>
    %12 = vector.multi_reduction <add>, %11, %cst_9 [1] : vector<8x4xf32> to vector<8xf32>
    %13 = vector.shape_cast %12 : vector<8xf32> to vector<8x1xf32>
    %cst_10 = arith.constant -5.000000e-01 : f32
    %14 = vector.broadcast %cst_10 : f32 to vector<8x1xf32>
    %15 = arith.mulf %14, %13 : vector<8x1xf32>
    %c0_11 = arith.constant 0 : index
    %16 = memref.load %arg5[%c0_11] : memref<1xf32, #tpu.memory_space<smem>>
    %17 = vector.broadcast %16 : f32 to vector<8x1xf32>
    %18 = arith.subf %15, %17 : vector<8x1xf32>
    %c0_12 = arith.constant 0 : index
    %c0_13 = arith.constant 0 : index
    %19 = vector.load %arg7[%c0_12, %c0_13] : memref<8x4xf32, #tpu.memory_space<vmem>>, vector<8x4xf32>
    tpu.vector_store %arg7[%c0_12, %c0_13], %10 {strides = array<i32>} : memref<8x4xf32, #tpu.memory_space<vmem>>, vector<8x4xf32>,
    %c0_14 = arith.constant 0 : index
    %c0_15 = arith.constant 0 : index
    %20 = vector.load %arg8[%c0_14, %c0_15] : memref<8x1xf32, #tpu.memory_space<vmem>>, vector<8x1xf32>
    tpu.vector_store %arg8[%c0_14, %c0_15], %18 {strides = array<i32>} : memref<8x1xf32, #tpu.memory_space<vmem>>, vector<8x1xf32>,
    return
  }
  func.func @transform_0(%arg0: i32) -> (i32, i32) {
    %c0_i32 = arith.constant 0 : i32
    %c0_i32_0 = arith.constant 0 : i32
    return %arg0, %c0_i32 : i32, i32
  }
  func.func @transform_1(%arg0: i32) -> (i32, i32) {
    %c0_i32 = arith.constant 0 : i32
    %c0_i32_0 = arith.constant 0 : i32
    %c0_i32_1 = arith.constant 0 : i32
    return %c0_i32, %c0_i32_0 : i32, i32
  }
  func.func @transform_2(%arg0: i32) -> (i32, i32) {
    %c0_i32 = arith.constant 0 : i32
    %c0_i32_0 = arith.constant 0 : i32
    %c0_i32_1 = arith.constant 0 : i32
    return %c0_i32, %c0_i32_0 : i32, i32
  }
  func.func @transform_3(%arg0: i32) -> (i32, i32) {
    %c0_i32 = arith.constant 0 : i32
    %c0_i32_0 = arith.constant 0 : i32
    %c0_i32_1 = arith.constant 0 : i32
    return %c0_i32, %c0_i32_0 : i32, i32
  }
  func.func @transform_4(%arg0: i32) -> i32 {
    %c0_i32 = arith.constant 0 : i32
    %c0_i32_0 = arith.constant 0 : i32
    return %c0_i32 : i32
  }
  func.func @transform_5(%arg0: i32) -> (i32, i32) {
    %c0_i32 = arith.constant 0 : i32
    %c0_i32_0 = arith.constant 0 : i32
    return %arg0, %c0_i32 : i32, i32
  }
  func.func @transform_6(%arg0: i32) -> (i32, i32) {
    %c0_i32 = arith.constant 0 : i32
    %c0_i32_0 = arith.constant 0 : i32
    return %arg0, %c0_i32 : i32, i32
  }
  func.func @transform_7(%arg0: i32) -> (i32, i32) {
    %c0_i32 = arith.constant 0 : i32
    %c0_i32_0 = arith.constant 0 : i32
    return %arg0, %c0_i32 : i32, i32
  }
}

</mosaic_0001>

<bundles_post_ra>
// kernel: tpu_custom_call.1
= control target key start
LH: loop header
LB: loop body
LE: loop exit
PB: predicated region body
PF: predicated region fallthrough
CT: control target
= control target key end

     0   :  { %v170_v0 = vmov 0.0|0.0   ;;  %vm171_vm0 = vmmov 0   ;;  %v172_v4 = vmov 0.0   ;;  %vm123_vm1 = vcmask 31744   ;;  %s248_s1 = inlined_call_operand.vmem [shape: f32[32,4], index: 1, kind: input, shape index: {}]   ;;  %s249_s5 = inlined_call_operand.vmem [shape: f32[8,4], index: 5, kind: input, shape index: {}]   ;;  %s250_s0 = inlined_call_operand.vmem [shape: f32[8,32], index: 0, kind: input, shape index: {}]   ;;  %s251_s4 = inlined_call_operand.<no memory space> [shape: f32[1], index: 4, kind: input, shape index: {}]   ;;  %s252_s7 = inlined_call_operand.vmem [shape: f32[8,1], index: 7, kind: output, shape index: {1}]   ;;  %s253_s3 = inlined_call_operand.vmem [shape: f32[1,4], index: 3, kind: input, shape index: {}]   ;;  %s254_s2 = inlined_call_operand.vmem [shape: f32[1,4], index: 2, kind: input, shape index: {}]   ;;  %s255_s6 = inlined_call_operand.vmem [shape: f32[8,4], index: 6, kind: output, shape index: {0}]  }
   0x1   :  { %161 = vmatprep.subr.bf16.mxu0 %v170_v0  ;;  %v28_v1 = vld [vmem:[%s248_s1] sm:$0xff]  ;;  %v29_v2 = vld [vmem:[%s248_s1 + $0x8] sm:$0xff]  ;;  %v30_v3 = vld [vmem:[%s248_s1 + $0x10] sm:$0xff]  ;;  %158 = vmatprep.mubr.msk.f32.mxu0 %vm171_vm0, %v172_v4  ;;  %vm39_vm2 = vcmask 261120   ;;  %v129_v13 = vstv %s251_s4  ;;  %vm132_vm3 = vcmask 7168  }
   0x2   :  { %v162_v5 = vpack.c.bf16 %v29_v2, %v28_v1  ;;  %v31_v6 = vld [vmem:[%s248_s1 + $0x18] sm:$0xff]  ;;  %v27_v7 = vld [vmem:[%s249_s5] sm:$0xff] }
   0x3   :  { %v122_v8 = vmul.f32 %v27_v7, %v27_v7  ;;  %v165_v9 = vpack.c.bf16 %v31_v6, %v30_v3  ;;  %v26_v11 = vld [vmem:[%s250_s0] sm:$0xff] }
   0x4   :  { %163 = vmatpush3.bf16.msra.mxu0 %v162_v5  ;;  %v144_v16 = vld [vmem:[%s253_s3] ss:$0 sm:$0xff] }
   0x5   :  { %164 = vmatprep.subr.bf16.mxu0 %v170_v0  ;;  %v124_v10 = vsel %vm123_vm1, %v122_v8, 0.0  ;;  %v142_v17 = vld [vmem:[%s254_s2] ss:$0 sm:$0xff]  ;;  %v120_v18 = vmul.f32 %v144_v16, %v27_v7 }
   0x6   :  { %125 = vadd.xlane.f32.xlu0 %v124_v10 }
   0x8   :  { %166 = vmatpush3.bf16.msra.mxu0 %v165_v9 }
   0xb   :  { %159 = vmatmul.mubr.msk.f32.vlgmr.msra.gmra.mrb[0].mxu0 %vm39_vm2, %v26_v11 }
  0x93   :  { %v126_v12 = vpop.xlane.xlu0 %125 }
  0x94   :  { %v127_v14 = vmul.f32 -0.5, %v126_v12 }
  0x96   :  { %v130_v15 = vsub.f32 %v127_v14, %v129_v13 }
  0x98   :  { %133 = vst.msk [vmem:[%s252_s7] sm:$0xff] %vm132_vm3, %v130_v15 }
  0xde   :  { %v109_v19 = vpop.f32.mrb[0].mxu0 }
  0xdf   :  { %v110_v20 = vadd.f32 %v142_v17, %v109_v19  ;;  %v160_v21 = vpop.f32.mrb[1].mxu0 }
  0xe1   :  { %v121_v22 = vadd.f32 %v120_v18, %v110_v20 }
  0xe3   :  { %131 = vst.msk [vmem:[%s255_s6] sm:$0xff] %vm123_vm1, %v121_v22 }

</bundles_post_ra>
